<compile_context>
chip_gen: v6e
topology: v6e:2x2x1
jax: 0.10.0
libtpu: 0.0.40
codegen_flags: <defaults>
</compile_context>

<pallas_src>
import functools
import math

import jax
import jax.numpy as jnp
from jax.experimental import pallas as pl
from jax.experimental.pallas import tpu as pltpu


def _round_up(x, m):
    return ((x + m - 1) // m) * m


def _ztoc_layer_dims(width, out_width, scale=4):
    """Replicates ZtoC.__init__ layer-size construction."""
    dims = []
    i = width
    o = int(width * scale)
    while o >= 16:
        dims.append((i, o))            # Linear(i, o) + ReLU
        i = o
        o = o // 2
    dims.append((i, out_width))        # Linear(i, outWidth) + Sigmoid
    return dims


def _mlp_kernel(n_layers, x_ref, *rest):
    """Fused MLP on X^T: (Linear + ReLU) * (n_layers-1) + Linear + Sigmoid, all in VMEM.

    x_ref:       (bt, width) f32 block of z (cast to bf16 in-kernel)
    param refs:  w_l (out, in) bf16 (PyTorch layout, resident), b_l (out, 1) f32 (resident)
    out_ref:     (out_width, bt) f32  -- batch on lanes => lane-dense stores
    """
    out_ref = rest[-1]
    param_refs = rest[:-1]             # w0, b0, w1, b1, ..., w_{L-1}, b_{L-1}

    x = x_ref[...].astype(jnp.bfloat16)          # VPU cast, hidden under MXU/DMA
    h = x.T                                       # (width, bt): batch -> lane axis
    for l in range(n_layers):
        w = param_refs[2 * l][...]                # (out, in) bf16
        b = param_refs[2 * l + 1][...]            # (out, 1)  f32
        acc = jnp.dot(w, h, preferred_element_type=jnp.float32)   # MXU, f32 accumulation
        hf = acc + b                              # lane-broadcast bias add (f32 VPU)
        if l < n_layers - 1:
            h = jnp.maximum(hf, 0.0).astype(jnp.bfloat16)          # ReLU, carried in bf16
        else:
            out_ref[...] = jax.nn.sigmoid(hf).astype(out_ref.dtype)  # EUP sigmoid, lane-dense store


def prepare_ztoc_params(weights, biases):
    """One-time layout/dtype prep (hoisted out of the forward pass).

    PyTorch layout w (out, in) is exactly what the flipped (batch-on-lanes) kernel wants,
    so only a dtype cast is needed; biases become (out, 1) columns for lane-broadcast.
    """
    ws, bs = [], []
    for w, b in zip(weights, biases):
        ws.append(jnp.asarray(w, jnp.float32).astype(jnp.bfloat16))   # (out, in) bf16
        bs.append(jnp.asarray(b, jnp.float32).reshape(-1, 1))          # (out, 1)  f32
    return tuple(ws), tuple(bs)


def _choose_batch_tile(B, batch_tile):
    """Lane-aligned (multiple-of-128) batch tile; keep >=2 grid steps when the batch allows it
    so both v7x TensorCores get a share (no-op on single-TC v5e/v6e)."""
    b_up = _round_up(max(B, 1), 128)
    bt = min(_round_up(max(batch_tile, 1), 128), b_up)
    if b_up // bt < 2 and b_up >= 256:
        bt = min(bt, _round_up(pl.cdiv(b_up, 2), 128))
    return bt


@functools.partial(jax.jit, static_argnames=("batch_tile",))
def ztoc_forward(z, ws, bs, *, batch_tile=2048):
    """ZtoC forward pass: one fused Pallas kernel, tiled over batch (batch on the lane axis).

    `ws` / `bs` must come from prepare_ztoc_params(). Returns (B, out_width) f32,
    matching the PyTorch module's output layout.
    """
    B, width = z.shape
    n_layers = len(ws)
    out_width = ws[-1].shape[0]

    bt = _choose_batch_tile(B, batch_tile)
    num_tiles = pl.cdiv(B, bt)
    B_pad = num_tiles * bt

    z_in = z.astype(jnp.float32)
    if B_pad != B:
        # Pad only for ragged batches; tile-aligned (large) batches take the zero-copy path.
        # Padded rows just produce sigmoid(bias-chain) values that are sliced off below.
        z_in = jnp.pad(z_in, ((0, B_pad - B), (0, 0)))

    in_specs = [pl.BlockSpec((bt, width), lambda i: (i, 0))]
    params_flat = []
    for w, b in zip(ws, bs):
        # Constant index_map => weights/biases stay resident in VMEM across all grid steps.
        in_specs.append(pl.BlockSpec(w.shape, lambda i: (0, 0)))
        in_specs.append(pl.BlockSpec(b.shape, lambda i: (0, 0)))
        params_flat.extend([w, b])

    out = pl.pallas_call(
        functools.partial(_mlp_kernel, n_layers),
        out_shape=jax.ShapeDtypeStruct((out_width, B_pad), jnp.float32),
        grid_spec=pltpu.PrefetchScalarGridSpec(
            num_scalar_prefetch=0,
            grid=(num_tiles,),
            in_specs=in_specs,
            out_specs=pl.BlockSpec((out_width, bt), lambda i: (0, i)),
        ),
        compiler_params=pltpu.CompilerParams(
            dimension_semantics=("parallel",),        # batch axis is independent per tile
            vmem_limit_bytes=32 * 1024 * 1024,        # headroom for bt up to ~8192 on every gen
        ),
    )(z_in, *params_flat)

    # Kernel emits (out_width, B_pad) lane-dense; restore PyTorch (B, out_width) layout once here.
    return out.T[:B]


def init_ztoc_params(key, width, out_width, scale=4):
    """Deterministic PyTorch-style (uniform +/- 1/sqrt(fan_in)) initialization."""
    dims = _ztoc_layer_dims(width, out_width, scale)
    weights, biases = [], []
    for (fan_in, fan_out) in dims:
        key, kw, kb = jax.random.split(key, 3)
        bound = 1.0 / math.sqrt(fan_in)
        w = jax.random.uniform(kw, (fan_out, fan_in), jnp.float32, -bound, bound)
        b = jax.random.uniform(kb, (1, fan_out), jnp.float32, -bound, bound)
        weights.append(w)
        biases.append(b)
    return weights, biases


def ztoc_reference(z, weights, biases):
    """Plain-JAX f32 reference of the same forward pass (for correctness check)."""
    h = z
    n = len(weights)
    for l, (w, b) in enumerate(zip(weights, biases)):
        h = h @ w.T + b.reshape(1, -1)
        h = jnp.maximum(h, 0.0) if l < n - 1 else jax.nn.sigmoid(h)
    return h


# TODO(synk): ZtoC.save / ZtoC.load are host-side checkpoint I/O; no kernel equivalent needed.

if __name__ == "__main__":
    width, out_width, scale = 32, 16, 4   # layers: 32->128->64->32->16 (ReLU) -> 16 (Sigmoid)

    key = jax.random.PRNGKey(0)
    key, kz1, kz2 = jax.random.split(key, 3)
    weights, biases = init_ztoc_params(key, width, out_width, scale)
    ws, bs = prepare_ztoc_params(weights, biases)     # one-time layout/dtype prep

    # Small demo batch (single grid step, padded up to one 128-lane tile).
    z_small = jax.random.normal(kz1, (8, width), jnp.float32)
    out_small = jax.block_until_ready(ztoc_forward(z_small, ws, bs))
    ref_small = ztoc_reference(z_small, weights, biases)
    assert out_small.shape == (8, out_width)
    # bf16 MXU operands / bf16 carried activations with f32 accumulation -> loosened tolerance.
    assert jnp.allclose(out_small, ref_small, atol=2e-2, rtol=2e-2), "small-batch mismatch"

    # Ragged batch exercising conditional padding + a multi-step grid (still small/fast).
    z_ragged = jax.random.normal(kz2, (300, width), jnp.float32)
    out_ragged = jax.block_until_ready(
        ztoc_forward(z_ragged, ws, bs, batch_tile=128))
    ref_ragged = ztoc_reference(z_ragged, weights, biases)
    assert out_ragged.shape == (300, out_width)
    assert jnp.allclose(out_ragged, ref_ragged, atol=2e-2, rtol=2e-2), "ragged-batch mismatch"

    print("KERNEL_OK")
</pallas_src>

<mosaic_0001>
module attributes {stable_mosaic.version = 11 : i64} {
  func.func @_mlp_kernel(%arg0: i32, %arg1: memref<128x32xf32, #tpu.memory_space<vmem>>, %arg2: memref<128x32xbf16, #tpu.memory_space<vmem>>, %arg3: memref<128x1xf32, #tpu.memory_space<vmem>>, %arg4: memref<64x128xbf16, #tpu.memory_space<vmem>>, %arg5: memref<64x1xf32, #tpu.memory_space<vmem>>, %arg6: memref<32x64xbf16, #tpu.memory_space<vmem>>, %arg7: memref<32x1xf32, #tpu.memory_space<vmem>>, %arg8: memref<16x32xbf16, #tpu.memory_space<vmem>>, %arg9: memref<16x1xf32, #tpu.memory_space<vmem>>, %arg10: memref<16x16xbf16, #tpu.memory_space<vmem>>, %arg11: memref<16x1xf32, #tpu.memory_space<vmem>>, %arg12: memref<16x128xf32, #tpu.memory_space<vmem>>) attributes {dimension_semantics = [#tpu.dimension_semantics<parallel>], iteration_bounds = array<i64: 1>, scalar_prefetch = 0 : i64, scratch_operands = 0 : i64, tpu.core_type = #tpu.core_type<tc>, window_params = [{transform_indices = @transform_0, window_bounds = array<i64: 128, 32>}, {pipeline_mode = #tpu.pipeline_mode<synchronous>, transform_indices = @transform_1, window_bounds = array<i64: 128, 32>}, {pipeline_mode = #tpu.pipeline_mode<synchronous>, transform_indices = @transform_2, window_bounds = array<i64: 128, 1>}, {pipeline_mode = #tpu.pipeline_mode<synchronous>, transform_indices = @transform_3, window_bounds = array<i64: 64, 128>}, {pipeline_mode = #tpu.pipeline_mode<synchronous>, transform_indices = @transform_4, window_bounds = array<i64: 64, 1>}, {pipeline_mode = #tpu.pipeline_mode<synchronous>, transform_indices = @transform_5, window_bounds = array<i64: 32, 64>}, {pipeline_mode = #tpu.pipeline_mode<synchronous>, transform_indices = @transform_6, window_bounds = array<i64: 32, 1>}, {pipeline_mode = #tpu.pipeline_mode<synchronous>, transform_indices = @transform_7, window_bounds = array<i64: 16, 32>}, {pipeline_mode = #tpu.pipeline_mode<synchronous>, transform_indices = @transform_8, window_bounds = array<i64: 16, 1>}, {pipeline_mode = #tpu.pipeline_mode<synchronous>, transform_indices = @transform_9, window_bounds = array<i64: 16, 16>}, {pipeline_mode = #tpu.pipeline_mode<synchronous>, transform_indices = @transform_10, window_bounds = array<i64: 16, 1>}, {transform_indices = @transform_11, window_bounds = array<i64: 16, 128>}]} {
    %c0 = arith.constant 0 : index
    %c0_0 = arith.constant 0 : index
    %0 = vector.load %arg1[%c0, %c0_0] : memref<128x32xf32, #tpu.memory_space<vmem>>, vector<128x32xf32>
    %1 = arith.truncf %0 : vector<128x32xf32> to vector<128x32xbf16>
    %2 = tpu.transpose %1, [1, 0] : vector<128x32xbf16> -> vector<32x128xbf16>
    %c0_1 = arith.constant 0 : index
    %c0_2 = arith.constant 0 : index
    %3 = vector.load %arg2[%c0_1, %c0_2] : memref<128x32xbf16, #tpu.memory_space<vmem>>, vector<128x32xbf16>
    %c0_3 = arith.constant 0 : index
    %c0_4 = arith.constant 0 : index
    %4 = vector.load %arg3[%c0_3, %c0_4] : memref<128x1xf32, #tpu.memory_space<vmem>>, vector<128x1xf32>
    %cst = arith.constant dense<0.000000e+00> : vector<128x128xf32>
    %5 = tpu.matmul %3, %2, %cst {dimension_numbers = #tpu.dot_dimension_numbers<[1], [0], [0], [1], [0, 0, 1, 1], [], []>} : vector<128x32xbf16>, vector<32x128xbf16>, vector<128x128xf32> -> vector<128x128xf32>
    %6 = vector.broadcast %4 : vector<128x1xf32> to vector<128x128xf32>
    %7 = arith.addf %5, %6 : vector<128x128xf32>
    %cst_5 = arith.constant 0.000000e+00 : f32
    %8 = vector.broadcast %cst_5 : f32 to vector<128x128xf32>
    %9 = arith.maximumf %7, %8 : vector<128x128xf32>
    %10 = arith.truncf %9 : vector<128x128xf32> to vector<128x128xbf16>
    %c0_6 = arith.constant 0 : index
    %c0_7 = arith.constant 0 : index
    %11 = vector.load %arg4[%c0_6, %c0_7] : memref<64x128xbf16, #tpu.memory_space<vmem>>, vector<64x128xbf16>
    %c0_8 = arith.constant 0 : index
    %c0_9 = arith.constant 0 : index
    %12 = vector.load %arg5[%c0_8, %c0_9] : memref<64x1xf32, #tpu.memory_space<vmem>>, vector<64x1xf32>
    %cst_10 = arith.constant dense<0.000000e+00> : vector<64x128xf32>
    %13 = tpu.matmul %11, %10, %cst_10 {dimension_numbers = #tpu.dot_dimension_numbers<[1], [0], [0], [1], [0, 0, 1, 1], [], []>} : vector<64x128xbf16>, vector<128x128xbf16>, vector<64x128xf32> -> vector<64x128xf32>
    %14 = vector.broadcast %12 : vector<64x1xf32> to vector<64x128xf32>
    %15 = arith.addf %13, %14 : vector<64x128xf32>
    %cst_11 = arith.constant 0.000000e+00 : f32
    %16 = vector.broadcast %cst_11 : f32 to vector<64x128xf32>
    %17 = arith.maximumf %15, %16 : vector<64x128xf32>
    %18 = arith.truncf %17 : vector<64x128xf32> to vector<64x128xbf16>
    %c0_12 = arith.constant 0 : index
    %c0_13 = arith.constant 0 : index
    %19 = vector.load %arg6[%c0_12, %c0_13] : memref<32x64xbf16, #tpu.memory_space<vmem>>, vector<32x64xbf16>
    %c0_14 = arith.constant 0 : index
    %c0_15 = arith.constant 0 : index
    %20 = vector.load %arg7[%c0_14, %c0_15] : memref<32x1xf32, #tpu.memory_space<vmem>>, vector<32x1xf32>
    %cst_16 = arith.constant dense<0.000000e+00> : vector<32x128xf32>
    %21 = tpu.matmul %19, %18, %cst_16 {dimension_numbers = #tpu.dot_dimension_numbers<[1], [0], [0], [1], [0, 0, 1, 1], [], []>} : vector<32x64xbf16>, vector<64x128xbf16>, vector<32x128xf32> -> vector<32x128xf32>
    %22 = vector.broadcast %20 : vector<32x1xf32> to vector<32x128xf32>
    %23 = arith.addf %21, %22 : vector<32x128xf32>
    %cst_17 = arith.constant 0.000000e+00 : f32
    %24 = vector.broadcast %cst_17 : f32 to vector<32x128xf32>
    %25 = arith.maximumf %23, %24 : vector<32x128xf32>
    %26 = arith.truncf %25 : vector<32x128xf32> to vector<32x128xbf16>
    %c0_18 = arith.constant 0 : index
    %c0_19 = arith.constant 0 : index
    %27 = vector.load %arg8[%c0_18, %c0_19] : memref<16x32xbf16, #tpu.memory_space<vmem>>, vector<16x32xbf16>
    %c0_20 = arith.constant 0 : index
    %c0_21 = arith.constant 0 : index
    %28 = vector.load %arg9[%c0_20, %c0_21] : memref<16x1xf32, #tpu.memory_space<vmem>>, vector<16x1xf32>
    %cst_22 = arith.constant dense<0.000000e+00> : vector<16x128xf32>
    %29 = tpu.matmul %27, %26, %cst_22 {dimension_numbers = #tpu.dot_dimension_numbers<[1], [0], [0], [1], [0, 0, 1, 1], [], []>} : vector<16x32xbf16>, vector<32x128xbf16>, vector<16x128xf32> -> vector<16x128xf32>
    %30 = vector.broadcast %28 : vector<16x1xf32> to vector<16x128xf32>
    %31 = arith.addf %29, %30 : vector<16x128xf32>
    %cst_23 = arith.constant 0.000000e+00 : f32
    %32 = vector.broadcast %cst_23 : f32 to vector<16x128xf32>
    %33 = arith.maximumf %31, %32 : vector<16x128xf32>
    %34 = arith.truncf %33 : vector<16x128xf32> to vector<16x128xbf16>
    %c0_24 = arith.constant 0 : index
    %c0_25 = arith.constant 0 : index
    %35 = vector.load %arg10[%c0_24, %c0_25] : memref<16x16xbf16, #tpu.memory_space<vmem>>, vector<16x16xbf16>
    %c0_26 = arith.constant 0 : index
    %c0_27 = arith.constant 0 : index
    %36 = vector.load %arg11[%c0_26, %c0_27] : memref<16x1xf32, #tpu.memory_space<vmem>>, vector<16x1xf32>
    %cst_28 = arith.constant dense<0.000000e+00> : vector<16x128xf32>
    %37 = tpu.matmul %35, %34, %cst_28 {dimension_numbers = #tpu.dot_dimension_numbers<[1], [0], [0], [1], [0, 0, 1, 1], [], []>} : vector<16x16xbf16>, vector<16x128xbf16>, vector<16x128xf32> -> vector<16x128xf32>
    %38 = vector.broadcast %36 : vector<16x1xf32> to vector<16x128xf32>
    %39 = arith.addf %37, %38 : vector<16x128xf32>
    %40 = arith.negf %39 : vector<16x128xf32>
    %41 = math.exp %40 : vector<16x128xf32>
    %cst_29 = arith.constant 1.000000e+00 : f32
    %42 = vector.broadcast %cst_29 : f32 to vector<16x128xf32>
    %43 = arith.addf %42, %41 : vector<16x128xf32>
    %44 = arith.divf %42, %43 : vector<16x128xf32>
    %c0_30 = arith.constant 0 : index
    %c0_31 = arith.constant 0 : index
    %45 = vector.load %arg12[%c0_30, %c0_31] : memref<16x128xf32, #tpu.memory_space<vmem>>, vector<16x128xf32>
    tpu.vector_store %arg12[%c0_30, %c0_31], %44 {strides = array<i32>} : memref<16x128xf32, #tpu.memory_space<vmem>>, vector<16x128xf32>,
    return
  }
  func.func @transform_0(%arg0: i32) -> (i32, i32) {
    %c0_i32 = arith.constant 0 : i32
    %c0_i32_0 = arith.constant 0 : i32
    return %arg0, %c0_i32 : i32, i32
  }
  func.func @transform_1(%arg0: i32) -> (i32, i32) {
    %c0_i32 = arith.constant 0 : i32
    %c0_i32_0 = arith.constant 0 : i32
    %c0_i32_1 = arith.constant 0 : i32
    return %c0_i32, %c0_i32_0 : i32, i32
  }
  func.func @transform_2(%arg0: i32) -> (i32, i32) {
    %c0_i32 = arith.constant 0 : i32
    %c0_i32_0 = arith.constant 0 : i32
    %c0_i32_1 = arith.constant 0 : i32
    return %c0_i32, %c0_i32_0 : i32, i32
  }
  func.func @transform_3(%arg0: i32) -> (i32, i32) {
    %c0_i32 = arith.constant 0 : i32
    %c0_i32_0 = arith.constant 0 : i32
    %c0_i32_1 = arith.constant 0 : i32
    return %c0_i32, %c0_i32_0 : i32, i32
  }
  func.func @transform_4(%arg0: i32) -> (i32, i32) {
    %c0_i32 = arith.constant 0 : i32
    %c0_i32_0 = arith.constant 0 : i32
    %c0_i32_1 = arith.constant 0 : i32
    return %c0_i32, %c0_i32_0 : i32, i32
  }
  func.func @transform_5(%arg0: i32) -> (i32, i32) {
    %c0_i32 = arith.constant 0 : i32
    %c0_i32_0 = arith.constant 0 : i32
    %c0_i32_1 = arith.constant 0 : i32
    return %c0_i32, %c0_i32_0 : i32, i32
  }
  func.func @transform_6(%arg0: i32) -> (i32, i32) {
    %c0_i32 = arith.constant 0 : i32
    %c0_i32_0 = arith.constant 0 : i32
    %c0_i32_1 = arith.constant 0 : i32
    return %c0_i32, %c0_i32_0 : i32, i32
  }
  func.func @transform_7(%arg0: i32) -> (i32, i32) {
    %c0_i32 = arith.constant 0 : i32
    %c0_i32_0 = arith.constant 0 : i32
    %c0_i32_1 = arith.constant 0 : i32
    return %c0_i32, %c0_i32_0 : i32, i32
  }
  func.func @transform_8(%arg0: i32) -> (i32, i32) {
    %c0_i32 = arith.constant 0 : i32
    %c0_i32_0 = arith.constant 0 : i32
    %c0_i32_1 = arith.constant 0 : i32
    return %c0_i32, %c0_i32_0 : i32, i32
  }
  func.func @transform_9(%arg0: i32) -> (i32, i32) {
    %c0_i32 = arith.constant 0 : i32
    %c0_i32_0 = arith.constant 0 : i32
    %c0_i32_1 = arith.constant 0 : i32
    return %c0_i32, %c0_i32_0 : i32, i32
  }
  func.func @transform_10(%arg0: i32) -> (i32, i32) {
    %c0_i32 = arith.constant 0 : i32
    %c0_i32_0 = arith.constant 0 : i32
    %c0_i32_1 = arith.constant 0 : i32
    return %c0_i32, %c0_i32_0 : i32, i32
  }
  func.func @transform_11(%arg0: i32) -> (i32, i32) {
    %c0_i32 = arith.constant 0 : i32
    %c0_i32_0 = arith.constant 0 : i32
    return %c0_i32, %arg0 : i32, i32
  }
}

</mosaic_0001>

<bundles_post_ra>
// kernel: ztoc_forward.1
= control target key start
LH: loop header
LB: loop body
LE: loop exit
PB: predicated region body
PF: predicated region fallthrough
CT: control target
= control target key end

     0   :  { %vm215_vm0 = vcmask 261120   ;;  %v978_v3 = vmov 0   ;;  %vm580_vm1 = vcmask 523264   ;;  %vm980_vm2 = vmmov 0   ;;  %s1277_s0 = inlined_call_operand.vmem [shape: f32[128,32], index: 0, kind: input, shape index: {}]   ;;  %s1278_s1 = inlined_call_operand.vmem [shape: bf16[128,32], index: 1, kind: input, shape index: {}]   ;;  %s1279_s2 = inlined_call_operand.vmem [shape: f32[128,1], index: 2, kind: input, shape index: {}]   ;;  %s1280_s4 = inlined_call_operand.vmem [shape: f32[64,1], index: 4, kind: input, shape index: {}]   ;;  %s1281_s6 = inlined_call_operand.vmem [shape: f32[32,1], index: 6, kind: input, shape index: {}]   ;;  %s1282_s8 = inlined_call_operand.vmem [shape: f32[16,1], index: 8, kind: input, shape index: {}]   ;;  %s1283_s10 = inlined_call_operand.vmem [shape: f32[16,1], index: 10, kind: input, shape index: {}]   ;;  %s1284_s3 = inlined_call_operand.vmem [shape: bf16[64,128], index: 3, kind: input, shape index: {}]   ;;  %s1285_s5 = inlined_call_operand.vmem [shape: bf16[32,64], index: 5, kind: input, shape index: {}]   ;;  %s1286_s7 = inlined_call_operand.vmem [shape: bf16[16,32], index: 7, kind: input, shape index: {}]   ;;  %s1287_s9 = inlined_call_operand.vmem [shape: bf16[16,16], index: 9, kind: input, shape index: {}]   ;;  %s1288_s11 = inlined_call_operand.vmem [shape: f32[16,128], index: 11, kind: output, shape index: {}]  }
   0x1   :  { %v53_v0 = vld [vmem:[%s1277_s0 + $0x70] sm:$0xff]  ;;  %v54_v1 = vld [vmem:[%s1277_s0 + $0x78] sm:$0xff]  ;;  %v51_v2 = vld [vmem:[%s1277_s0 + $0x60] sm:$0xff]  ;;  %952 = vset.pattern.permute.xlu0 %v978_v3  ;;  %953 = vset.pattern.permute.xlu1 %v978_v3  ;;  %vm727_vm3 = vcmask 130048  }
   0x2   :  { %v62_v4 = vpack.c.bf16 %v54_v1, %v53_v0  ;;  %v52_v5 = vld [vmem:[%s1277_s0 + $0x68] sm:$0xff]  ;;  %v49_v8 = vld [vmem:[%s1277_s0 + $0x50] sm:$0xff]  ;;  %v50_v9 = vld [vmem:[%s1277_s0 + $0x58] sm:$0xff] }
   0x3   :  { %v61_v6 = vpack.c.bf16 %v52_v5, %v51_v2  ;;  %v954_v10 = vld [vmem:[%s1278_s1] sm:$0xff]   ;;  %v60_v12 = vpack.c.bf16 %v50_v9, %v49_v8  ;;  %v93_v13 = vld [vmem:[%s1279_s2 + $0x70] sm:$0xff]  ;;  %v48_v15 = vld [vmem:[%s1277_s0 + $0x48] sm:$0xff] }
   0x4   :  { %941 = vmatprep.subr.msk.bf16.mxu0 %vm215_vm0, %v62_v4  ;;  %v262_v7 = vsel %vm215_vm0, %v62_v4, 0  ;;  %875 = vmatprep.mubr.msk.bf16.mxu0 %vm215_vm0, %v954_v10  ;;  %v47_v14 = vld [vmem:[%s1277_s0 + $0x40] sm:$0xff]  ;;  %v94_v17 = vld [vmem:[%s1279_s2 + $0x78] sm:$0xff]  ;;  %v92_v18 = vld [vmem:[%s1279_s2 + $0x68] sm:$0xff] }
   0x5   :  { %860 = vmatpush3.bf16.xpose.msra.mxu0 %v262_v7  ;;  %v259_v11 = vsel %vm215_vm0, %v61_v6, 0  ;;  %167 = vperm.xlu0 %952, %v93_v13   ;;  %v91_v16 = vld [vmem:[%s1279_s2 + $0x60] sm:$0xff]  ;;  %v256_v19 = vsel %vm215_vm0, %v60_v12, 0  ;;  %v59_v20 = vpack.c.bf16 %v48_v15, %v47_v14  ;;  %v89_v21 = vld [vmem:[%s1279_s2 + $0x50] sm:$0xff]  ;;  %v90_v22 = vld [vmem:[%s1279_s2 + $0x58] sm:$0xff] }
   0x6   :  { %942 = vmatprep.subr.msk.bf16.mxu0 %vm215_vm0, %v61_v6  ;;  %157 = vperm.xlu1 %953, %v91_v16   ;;  %v45_v23 = vld [vmem:[%s1277_s0 + $0x30] sm:$0xff]  ;;  %v46_v24 = vld [vmem:[%s1277_s0 + $0x38] sm:$0xff]  ;;  %v87_v25 = vld [vmem:[%s1279_s2 + $0x40] sm:$0xff] }
   0x7   :  { %v88_v26 = vld [vmem:[%s1279_s2 + $0x48] sm:$0xff]  ;;  %v253_v27 = vsel %vm215_vm0, %v59_v20, 0  ;;  %v58_v28 = vpack.c.bf16 %v46_v24, %v45_v23  ;;  %v85_v29 = vld [vmem:[%s1279_s2 + $0x30] sm:$0xff]  ;;  %v86_v30 = vld [vmem:[%s1279_s2 + $0x38] sm:$0xff] }
   0x8   :  { %v43_v31 = vld [vmem:[%s1277_s0 + $0x20] sm:$0xff]  ;;  %v44_v32 = vld [vmem:[%s1277_s0 + $0x28] sm:$0xff]  ;;  %v81_v37 = vld [vmem:[%s1279_s2 + $0x10] sm:$0xff] }
   0x9   :  { %172 = vperm.xlu0 %952, %v94_v17   ;;  %v83_v33 = vld [vmem:[%s1279_s2 + $0x20] sm:$0xff]  ;;  %v84_v34 = vld [vmem:[%s1279_s2 + $0x28] sm:$0xff]  ;;  %v250_v35 = vsel %vm215_vm0, %v58_v28, 0  ;;  %v57_v36 = vpack.c.bf16 %v44_v32, %v43_v31  ;;  %v82_v38 = vld [vmem:[%s1279_s2 + $0x18] sm:$0xff] }
   0xa   :  { %162 = vperm.xlu1 %953, %v92_v18   ;;  %v41_v39 = vld [vmem:[%s1277_s0 + $0x10] sm:$0xff]  ;;  %v42_v40 = vld [vmem:[%s1277_s0 + $0x18] sm:$0xff]  ;;  %v79_v41 = vld [vmem:[%s1279_s2] sm:$0xff] }
   0xb   :  { %v80_v42 = vld [vmem:[%s1279_s2 + $0x8] sm:$0xff]  ;;  %v247_v43 = vsel %vm215_vm0, %v57_v36, 0  ;;  %v56_v44 = vpack.c.bf16 %v42_v40, %v41_v39  ;;  %v399_v45 = vld [vmem:[%s1280_s4 + $0x30] sm:$0xff]  ;;  %v400_v46 = vld [vmem:[%s1280_s4 + $0x38] sm:$0xff] }
   0xc   :  { %v39_v47 = vld [vmem:[%s1277_s0] sm:$0xff]  ;;  %v40_v48 = vld [vmem:[%s1277_s0 + $0x8] sm:$0xff]  ;;  %v395_v53 = vld [vmem:[%s1280_s4 + $0x10] sm:$0xff] }
   0xd   :  { %862 = vmatpush3.bf16.xpose.msra.mxu0 %v259_v11  ;;  %147 = vperm.xlu0 %952, %v89_v21   ;;  %v397_v49 = vld [vmem:[%s1280_s4 + $0x20] sm:$0xff]  ;;  %v398_v50 = vld [vmem:[%s1280_s4 + $0x28] sm:$0xff]  ;;  %v244_v51 = vsel %vm215_vm0, %v56_v44, 0  ;;  %v55_v52 = vpack.c.bf16 %v40_v48, %v39_v47  ;;  %v396_v54 = vld [vmem:[%s1280_s4 + $0x18] sm:$0xff] }
   0xe   :  { %943 = vmatprep.subr.msk.bf16.mxu0 %vm215_vm0, %v60_v12  ;;  %152 = vperm.xlu1 %953, %v90_v22   ;;  %v393_v55 = vld [vmem:[%s1280_s4] sm:$0xff]  ;;  %v394_v56 = vld [vmem:[%s1280_s4 + $0x8] sm:$0xff]  ;;  %v548_v58 = vld [vmem:[%s1281_s6 + $0x10] sm:$0xff] }
   0xf   :  { %v241_v57 = vsel %vm215_vm0, %v55_v52, 0  ;;  %v549_v59 = vld [vmem:[%s1281_s6 + $0x18] sm:$0xff]  ;;  %v955_v60 = vld [vmem:[%s1278_s1 + $0x8] sm:$0xff]   ;;  %v546_v61 = vld [vmem:[%s1281_s6] sm:$0xff] }
  0x10   :  { %v956_v62 = vld [vmem:[%s1278_s1 + $0x10] sm:$0xff]   ;;  %v547_v63 = vld [vmem:[%s1281_s6 + $0x8] sm:$0xff]  ;;  %v644_v0 = vld [vmem:[%s1282_s8] sm:$0xff] }
  0x11   :  { %137 = vperm.xlu0 %952, %v87_v25   ;;  %v645_v1 = vld [vmem:[%s1282_s8 + $0x8] sm:$0xff]  ;;  %v957_v2 = vld [vmem:[%s1278_s1 + $0x18] sm:$0xff]   ;;  %v710_v3 = vld [vmem:[%s1283_s10] sm:$0xff] }
  0x12   :  { %142 = vperm.xlu1 %953, %v88_v26   ;;  %v958_v4 = vld [vmem:[%s1278_s1 + $0x20] sm:$0xff]   ;;  %v711_v5 = vld [vmem:[%s1283_s10 + $0x8] sm:$0xff]  ;;  %v960_v7 = vld [vmem:[%s1278_s1 + $0x30] sm:$0xff]  }
  0x13   :  { %v959_v6 = vld [vmem:[%s1278_s1 + $0x28] sm:$0xff]   ;;  %v961_v8 = vld [vmem:[%s1278_s1 + $0x38] sm:$0xff]   ;;  %v962_v9 = vld [vmem:[%s1284_s3] sm:$0xff]  }
  0x14   :  { %907 = vmatprep.mubr.bf16.mxu1 %v962_v9 }
  0x15   :  { %864 = vmatpush3.bf16.xpose.msra.mxu0 %v256_v19  ;;  %127 = vperm.xlu0 %952, %v85_v29  }
  0x16   :  { %944 = vmatprep.subr.msk.bf16.mxu0 %vm215_vm0, %v59_v20  ;;  %132 = vperm.xlu1 %953, %v86_v30  }
  0x19   :  { %117 = vperm.xlu0 %952, %v83_v33  }
  0x1a   :  { %122 = vperm.xlu1 %953, %v84_v34  }
  0x1d   :  { %866 = vmatpush3.bf16.xpose.msra.mxu0 %v253_v27  ;;  %107 = vperm.xlu0 %952, %v81_v37  }
  0x1e   :  { %945 = vmatprep.subr.msk.bf16.mxu0 %vm215_vm0, %v58_v28  ;;  %112 = vperm.xlu1 %953, %v82_v38  }
  0x21   :  { %97 = vperm.xlu0 %952, %v79_v41  }
  0x22   :  { %102 = vperm.xlu1 %953, %v80_v42  }
  0x25   :  { %868 = vmatpush3.bf16.xpose.msra.mxu0 %v250_v35  ;;  %433 = vperm.xlu0 %952, %v399_v45  }
  0x26   :  { %946 = vmatprep.subr.msk.bf16.mxu0 %vm215_vm0, %v57_v36  ;;  %438 = vperm.xlu1 %953, %v400_v46  }
  0x29   :  { %423 = vperm.xlu0 %952, %v397_v49  }
  0x2a   :  { %428 = vperm.xlu1 %953, %v398_v50  }
  0x2d   :  { %870 = vmatpush3.bf16.xpose.msra.mxu0 %v247_v43  ;;  %413 = vperm.xlu0 %952, %v395_v53  }
  0x2e   :  { %947 = vmatprep.subr.msk.bf16.mxu0 %vm215_vm0, %v56_v44  ;;  %418 = vperm.xlu1 %953, %v396_v54  }
  0x31   :  { %403 = vperm.xlu0 %952, %v393_v55  }
  0x32   :  { %408 = vperm.xlu1 %953, %v394_v56  }
  0x35   :  { %872 = vmatpush3.bf16.xpose.msra.mxu0 %v244_v51  ;;  %562 = vperm.xlu0 %952, %v548_v58  }
  0x36   :  { %948 = vmatprep.subr.msk.bf16.mxu0 %vm215_vm0, %v55_v52  ;;  %567 = vperm.xlu1 %953, %v549_v59  }
  0x39   :  { %552 = vperm.xlu0 %952, %v546_v61  }
  0x3a   :  { %557 = vperm.xlu1 %953, %v547_v63  }
  0x3d   :  { %874 = vmatpush3.bf16.xpose.msra.mxu0 %v241_v57  ;;  %648 = vperm.xlu0 %952, %v644_v0  }
  0x3e   :  { %653 = vperm.xlu1 %953, %v645_v1  }
  0x41   :  { %714 = vperm.xlu0 %952, %v710_v3  }
  0x42   :  { %719 = vperm.xlu1 %953, %v711_v5  }
  0x44   :  { %876 = vmatmul.mubr.msk.bf16.vlgmr.msra.gmra.mxu0 %vm215_vm0, %v955_v60 }
  0x45   :  { %879 = vmatprep.mubr.msk.bf16.mxu0 %vm215_vm0, %v956_v62 }
  0x4c   :  { %880 = vmatmul.mubr.msk.bf16.gmra.mxu0 %vm215_vm0, %v957_v2 }
  0x4d   :  { %883 = vmatprep.mubr.msk.bf16.mxu0 %vm215_vm0, %v958_v4 }
  0x54   :  { %884 = vmatmul.mubr.msk.bf16.gmra.mxu0 %vm215_vm0, %v959_v6 }
  0x55   :  { %887 = vmatprep.mubr.msk.bf16.mxu0 %vm215_vm0, %v960_v7 }
  0x5c   :  { %888 = vmatmul.mubr.msk.bf16.gmra.mxu0 %vm215_vm0, %v961_v8 }
  0x80   :  { %v168_v16 = vpop.permute.xlu0 %167 }
  0x81   :  { %v158_v14 = vpop.permute.xlu1 %157 }
  0x84   :  { %v173_v21 = vpop.permute.xlu0 %172 }
  0x85   :  { %v163_v19 = vpop.permute.xlu1 %162 }
  0x88   :  { %v148_v26 = vpop.permute.xlu0 %147 }
  0x89   :  { %v153_v24 = vpop.permute.xlu1 %152 }
  0x8c   :  { %v138_v32 = vpop.permute.xlu0 %137 }
  0x8d   :  { %v143_v29 = vpop.permute.xlu1 %142 }
  0x90   :  { %v128_v46 = vpop.permute.xlu0 %127 }
  0x91   :  { %v133_v41 = vpop.permute.xlu1 %132 }
  0x94   :  { %v118_v56 = vpop.permute.xlu0 %117 }
  0x95   :  { %v123_v52 = vpop.permute.xlu1 %122 }
  0x98   :  { %v108_v1 = vpop.permute.xlu0 %107 }
  0x99   :  { %v113_v62 = vpop.permute.xlu1 %112 }
  0x9d   :  { %v103_v7 = vpop.permute.xlu1 %102 }
 0x104   :  { %v1236_v10 = vpop.f32.mrf.mxu0 }
 0x105   :  { %v307_v5 = vadd.f32 %v1236_v10, %v108_v1  ;;  %v963_v10 = vld [vmem:[%s1284_s3 + $0x8] sm:$0xff]  }
 0x106   :  { %v1238_v11 = vpop.f32.mrf.mxu0 }
 0x108   :  { %v878_v12 = vpop.f32.mrf.mxu0 }
 0x109   :  { %v310_v2 = vadd.f32 %v878_v12, %v113_v62 }
 0x10a   :  { %v1240_v13 = vpop.f32.mrf.mxu0 }
 0x10b   :  { %v364_v8 = vmax.f32 %v310_v2, 0.0  ;;  %v302_v9 = vadd.f32 %v1240_v13, %v103_v7  ;;  %v964_v13 = vld [vmem:[%s1284_s3 + $0x10] sm:$0xff]  }
 0x10c   :  { %v881_v15 = vpop.f32.mrf.mxu0 }
 0x10d   :  { %v323_v57 = vadd.f32 %v881_v15, %v128_v46  ;;  %v98_v15 = vpop.permute.xlu0 %97  ;;  %v362_v12 = vmax.f32 %v302_v9, 0.0 }
 0x10e   :  { %v314_v17 = vpop.f32.mrf.mxu0 }
 0x10f   :  { %v367_v63 = vmax.f32 %v323_v57, 0.0  ;;  %v315_v0 = vadd.f32 %v314_v17, %v118_v56  ;;  %v299_v17 = vadd.f32 %v1238_v11, %v98_v15  ;;  %v965_v11 = vld [vmem:[%s1284_s3 + $0x18] sm:$0xff]  }
 0x110   :  { %v882_v18 = vpop.f32.mrf.mxu0 }
 0x111   :  { %v326_v53 = vadd.f32 %v882_v18, %v133_v41  ;;  %v365_v6 = vmax.f32 %v315_v0, 0.0 }
 0x112   :  { %v317_v20 = vpop.f32.mrf.mxu0 }
 0x113   :  { %v368_v59 = vmax.f32 %v326_v53, 0.0  ;;  %v318_v60 = vadd.f32 %v317_v20, %v123_v52 }
 0x114   :  { %v885_v22 = vpop.f32.mrf.mxu0 }
 0x115   :  { %v339_v42 = vadd.f32 %v885_v22, %v148_v26  ;;  %v380_v3 = vpack.c.bf16 %v368_v59, %v367_v63  ;;  %v366_v4 = vmax.f32 %v318_v60, 0.0  ;;  %v439_v22 = vpop.permute.xlu1 %438  ;;  %v979_v59 = vmov 0.0  }
 0x116   :  { %v330_v23 = vpop.f32.mrf.mxu0 }
 0x117   :  { %v371_v50 = vmax.f32 %v339_v42, 0.0  ;;  %v331_v51 = vadd.f32 %v330_v23, %v138_v32 }
 0x118   :  { %v886_v25 = vpop.f32.mrf.mxu0 }
 0x119   :  { %v342_v37 = vadd.f32 %v886_v25, %v153_v24  ;;  %v369_v58 = vmax.f32 %v331_v51, 0.0  ;;  %v434_v24 = vpop.permute.xlu0 %433 }
 0x11a   :  { %v333_v27 = vpop.f32.mrf.mxu0 }
 0x11b   :  { %v372_v47 = vmax.f32 %v342_v37, 0.0  ;;  %v334_v48 = vadd.f32 %v333_v27, %v143_v29  ;;  %v429_v27 = vpop.permute.xlu1 %428 }
 0x11c   :  { %v889_v28 = vpop.f32.mrf.mxu0 }
 0x11d   :  { %v355_v31 = vadd.f32 %v889_v28, %v168_v16  ;;  %v382_v54 = vpack.c.bf16 %v372_v47, %v371_v50  ;;  %v370_v55 = vmax.f32 %v334_v48, 0.0  ;;  %v363_v16 = vmax.f32 %v307_v5, 0.0  ;;  %v424_v29 = vpop.permute.xlu0 %423 }
 0x11e   :  { %v346_v30 = vpop.f32.mrf.mxu0 }
 0x11f   :  { %v347_v34 = vadd.f32 %v346_v30, %v158_v14  ;;  %v375_v38 = vmax.f32 %v355_v31, 0.0  ;;  %v381_v61 = vpack.c.bf16 %v370_v55, %v369_v58  ;;  %v379_v14 = vpack.c.bf16 %v366_v4, %v365_v6  ;;  %v967_v58 = vld [vmem:[%s1285_s5 + $0x8] sm:$0xff]  }
 0x120   :  { %v890_v33 = vpop.f32.mrf.mxu0  ;;  %v378_v18 = vpack.c.bf16 %v364_v8, %v363_v16 }
 0x121   :  { %v358_v35 = vadd.f32 %v890_v33, %v173_v21  ;;  %v373_v43 = vmax.f32 %v347_v34, 0.0  ;;  %v966_v21 = vld [vmem:[%s1285_s5] sm:$0xff]   ;;  %v419_v33 = vpop.permute.xlu1 %418  ;;  %v414_v37 = vpop.permute.xlu0 %413 }
 0x122   :  { %v349_v36 = vpop.f32.mrf.mxu0 }
 0x123   :  { %v376_v39 = vmax.f32 %v358_v35, 0.0  ;;  %v350_v40 = vadd.f32 %v349_v36, %v163_v19  ;;  %v361_v19 = vmax.f32 %v299_v17, 0.0 }
 0x125   :  { %v374_v44 = vmax.f32 %v350_v40, 0.0  ;;  %v384_v45 = vpack.c.bf16 %v376_v39, %v375_v38  ;;  %v377_v20 = vpack.c.bf16 %v362_v12, %v361_v19  ;;  %v409_v47 = vpop.permute.xlu1 %408  ;;  %v404_v51 = vpop.permute.xlu0 %403 }
 0x127   :  { %v383_v49 = vpack.c.bf16 %v374_v44, %v373_v43  ;;  %891 = vmatprep.subr.bf16.mxu1 %v384_v45 }
 0x128   :  { %892 = vmatpush3.bf16.msra.mxu1 %v384_v45 }
 0x129   :  { %893 = vmatprep.subr.bf16.mxu1 %v383_v49  ;;  %v563_v60 = vpop.permute.xlu0 %562 }
 0x12c   :  { %894 = vmatpush3.bf16.msra.mxu1 %v383_v49 }
 0x12d   :  { %895 = vmatprep.subr.bf16.mxu1 %v382_v54  ;;  %v553_v2 = vpop.permute.xlu0 %552 }
 0x130   :  { %896 = vmatpush3.bf16.msra.mxu1 %v382_v54 }
 0x131   :  { %897 = vmatprep.subr.bf16.mxu1 %v381_v61  ;;  %v649_v19 = vpop.permute.xlu0 %648 }
 0x134   :  { %898 = vmatpush3.bf16.msra.mxu1 %v381_v61  ;;  %v568_v61 = vpop.permute.xlu1 %567 }
 0x135   :  { %899 = vmatprep.subr.bf16.mxu1 %v380_v3 }
 0x138   :  { %900 = vmatpush3.bf16.msra.mxu1 %v380_v3  ;;  %v558_v4 = vpop.permute.xlu1 %557 }
 0x139   :  { %901 = vmatprep.subr.bf16.mxu1 %v379_v14 }
 0x13c   :  { %902 = vmatpush3.bf16.msra.mxu1 %v379_v14 }
 0x13d   :  { %903 = vmatprep.subr.bf16.mxu1 %v378_v18 }
 0x140   :  { %904 = vmatpush3.bf16.msra.mxu1 %v378_v18  ;;  %v968_v18 = vld [vmem:[%s1286_s7] sm:$0xff]  }
 0x141   :  { %905 = vmatprep.subr.bf16.mxu1 %v377_v20 }
 0x144   :  { %906 = vmatpush3.bf16.msra.mxu1 %v377_v20 }
 0x147   :  { %908 = vmatmul.mubr.bf16.vlgmr.msra.gmra.mxu1 %v963_v10 }
 0x148   :  { %911 = vmatprep.mubr.bf16.mxu1 %v964_v13  ;;  %v654_v13 = vpop.permute.xlu1 %653 }
 0x14f   :  { %912 = vmatmul.mubr.bf16.gmra.mxu1 %v965_v11 }
 0x150   :  { %923 = vmatprep.mubr.msk.bf16.mxu1 %vm580_vm1, %v966_v21 }
 0x207   :  { %v909_v23 = vpop.f32.mrf.mxu1 }
 0x208   :  { %v508_v43 = vadd.f32 %v909_v23, %v414_v37 }
 0x209   :  { %v499_v25 = vpop.f32.mrf.mxu1 }
 0x20a   :  { %v532_v52 = vmax.f32 %v508_v43, 0.0  ;;  %v500_v53 = vadd.f32 %v499_v25, %v404_v51 }
 0x20b   :  { %v910_v26 = vpop.f32.mrf.mxu1 }
 0x20c   :  { %v511_v39 = vadd.f32 %v910_v26, %v419_v33  ;;  %v530_v56 = vmax.f32 %v500_v53, 0.0  ;;  %v969_v26 = vld [vmem:[%s1287_s9] sm:$0xff]  }
 0x20d   :  { %v502_v28 = vpop.f32.mrf.mxu1 }
 0x20e   :  { %v533_v48 = vmax.f32 %v511_v39, 0.0  ;;  %v503_v49 = vadd.f32 %v502_v28, %v409_v47 }
 0x20f   :  { %v913_v30 = vpop.f32.mrf.mxu1 }
 0x210   :  { %v524_v32 = vadd.f32 %v913_v30, %v434_v24  ;;  %v539_v54 = vpack.c.bf16 %v533_v48, %v532_v52  ;;  %v531_v55 = vmax.f32 %v503_v49, 0.0 }
 0x211   :  { %v515_v31 = vpop.f32.mrf.mxu1 }
 0x212   :  { %v516_v35 = vadd.f32 %v515_v31, %v424_v29  ;;  %v536_v40 = vmax.f32 %v524_v32, 0.0  ;;  %v538_v57 = vpack.c.bf16 %v531_v55, %v530_v56  ;;  %v720_v32 = vpop.permute.xlu1 %719 }
 0x213   :  { %v914_v34 = vpop.f32.mrf.mxu1 }
 0x214   :  { %v527_v36 = vadd.f32 %v914_v34, %v439_v22  ;;  %v534_v44 = vmax.f32 %v516_v35, 0.0 }
 0x215   :  { %v518_v38 = vpop.f32.mrf.mxu1 }
 0x216   :  { %v537_v41 = vmax.f32 %v527_v36, 0.0  ;;  %v519_v42 = vadd.f32 %v518_v38, %v429_v27  ;;  %v715_v27 = vpop.permute.xlu0 %714 }
 0x218   :  { %v541_v45 = vpack.c.bf16 %v537_v41, %v536_v40  ;;  %v535_v46 = vmax.f32 %v519_v42, 0.0 }
 0x21a   :  { %v540_v50 = vpack.c.bf16 %v535_v46, %v534_v44  ;;  %915 = vmatprep.subr.bf16.mxu1 %v541_v45 }
 0x21b   :  { %916 = vmatpush3.bf16.msra.mxu1 %v541_v45 }
 0x21c   :  { %917 = vmatprep.subr.bf16.mxu1 %v540_v50 }
 0x21f   :  { %918 = vmatpush3.bf16.msra.mxu1 %v540_v50 }
 0x220   :  { %919 = vmatprep.subr.bf16.mxu1 %v539_v54 }
 0x223   :  { %920 = vmatpush3.bf16.msra.mxu1 %v539_v54 }
 0x224   :  { %921 = vmatprep.subr.bf16.mxu1 %v538_v57 }
 0x227   :  { %922 = vmatpush3.bf16.msra.mxu1 %v538_v57 }
 0x228   :  { %927 = vmatprep.subr.bf16.mxu1 %v979_v59 }
 0x22a   :  { %924 = vmatmul.mubr.msk.bf16.vlgmr.msra.gmra.mxu1 %vm580_vm1, %v967_v58 }
 0x22b   :  { %931 = vmatprep.mubr.msk.bf16.mxu1 %vm980_vm2, %v979_v59 }
 0x2ea   :  { %v925_v62 = vpop.f32.mrf.mxu1 }
 0x2eb   :  { %v630_v0 = vadd.f32 %v925_v62, %v563_v60 }
 0x2ec   :  { %v621_v63 = vpop.f32.mrf.mxu1 }
 0x2ed   :  { %v638_v6 = vmax.f32 %v630_v0, 0.0  ;;  %v622_v7 = vadd.f32 %v621_v63, %v553_v2 }
 0x2ee   :  { %v926_v1 = vpop.f32.mrf.mxu1 }
 0x2ef   :  { %v633_v3 = vadd.f32 %v926_v1, %v568_v61  ;;  %v636_v16 = vmax.f32 %v622_v7, 0.0 }
 0x2f0   :  { %v624_v5 = vpop.f32.mrf.mxu1 }
 0x2f1   :  { %v639_v8 = vmax.f32 %v633_v3, 0.0  ;;  %v625_v9 = vadd.f32 %v624_v5, %v558_v4 }
 0x2f3   :  { %v641_v14 = vpack.c.bf16 %v639_v8, %v638_v6  ;;  %v637_v15 = vmax.f32 %v625_v9, 0.0 }
 0x2f5   :  { %928 = vmatpush3.bf16.msra.mxu1 %v641_v14  ;;  %v640_v17 = vpack.c.bf16 %v637_v15, %v636_v16 }
 0x2f6   :  { %929 = vmatprep.subr.bf16.mxu1 %v979_v59 }
 0x2f9   :  { %930 = vmatpush3.bf16.msra.mxu1 %v640_v17 }
 0x2fa   :  { %935 = vmatprep.subr.bf16.mxu1 %v979_v59 }
 0x2fc   :  { %932 = vmatmul.mubr.msk.bf16.vlgmr.msra.gmra.mxu1 %vm215_vm0, %v968_v18 }
 0x2fd   :  { %937 = vmatprep.mubr.msk.bf16.mxu1 %vm980_vm2, %v979_v59 }
 0x3bc   :  { %v698_v12 = vpop.f32.mrf.mxu1 }
 0x3bd   :  { %v699_v10 = vadd.f32 %v698_v12, %v649_v19 }
 0x3be   :  { %v933_v20 = vpop.f32.mrf.mxu1 }
 0x3bf   :  { %v705_v23 = vmax.f32 %v699_v10, 0.0 }
 0x3c0   :  { %v701_v11 = vpop.f32.mrf.mxu1 }
 0x3c1   :  { %v702_v21 = vadd.f32 %v701_v11, %v654_v13 }
 0x3c2   :  { %v934_v22 = vpop.f32.mrf.mxu1 }
 0x3c3   :  { %v706_v24 = vmax.f32 %v702_v21, 0.0 }
 0x3c5   :  { %v707_v25 = vpack.c.bf16 %v706_v24, %v705_v23 }
 0x3c7   :  { %936 = vmatpush3.bf16.msra.mxu1 %v707_v25 }
 0x3ca   :  { %938 = vmatmul.mubr.msk.bf16.vlgmr.msra.gmra.mxu1 %vm727_vm3, %v969_v26 }
 0x48a   :  { %v765_v28 = vpop.f32.mrf.mxu1 }
 0x48b   :  { %v766_v29 = vadd.f32 %v765_v28, %v715_v27 }
 0x48c   :  { %v939_v30 = vpop.f32.mrf.mxu1 }
 0x48d   :  { %v818_v31 = vmul.f32 -1.442695, %v766_v29 }
 0x48e   :  { %v768_v33 = vpop.f32.mrf.mxu1 }
 0x48f   :  { %970 = vpow2.f32 %v818_v31  ;;  %v769_v34 = vadd.f32 %v768_v33, %v720_v32 }
 0x490   :  { %v940_v35 = vpop.f32.mrf.mxu1 }
 0x491   :  { %v819_v36 = vmul.f32 -1.442695, %v769_v34 }
 0x493   :  { %972 = vpow2.f32 %v819_v36 }
 0x49c   :  { %v971_v37 = vpop.eup %970 }
 0x49d   :  { %v778_v38 = vadd.f32 1.0, %v971_v37 }
 0x49f   :  { %974 = vrcp.f32 %v778_v38 }
 0x4a0   :  { %v973_v39 = vpop.eup %972 }
 0x4a1   :  { %v779_v40 = vadd.f32 1.0, %v973_v39 }
 0x4a3   :  { %976 = vrcp.f32 %v779_v40 }
 0x4ac   :  { %v975_v41 = vpop.eup %974 }
 0x4ad   :  { %784 = vst [vmem:[%s1288_s11] sm:$0xff] %v975_v41 }
 0x4b0   :  { %v977_v42 = vpop.eup %976 }
 0x4b1   :  { %785 = vst [vmem:[%s1288_s11 + $0x8] sm:$0xff] %v977_v42 }

</bundles_post_ra>
